<compile_context>
chip_gen: v6e
topology: v6e:2x2x1
jax: 0.10.0
libtpu: 0.0.40
codegen_flags: <defaults>
</compile_context>

<pallas_src>
import numpy as np
import jax
import jax.numpy as jnp
from jax.experimental import pallas as pl
from jax.experimental.pallas import tpu as pltpu

# Memory-space enum (name differs across JAX versions).
try:
    _VMEM = pltpu.MemorySpace.VMEM
except AttributeError:  # older naming
    _VMEM = pltpu.TPUMemorySpace.VMEM


# ----------------------------------------------------------------------------
# Graph construction (glue, plain numpy) -- mirrors get_edge_info('ts_un').
# ----------------------------------------------------------------------------
def build_normalized_adjacency(num_nodes: int, k: int) -> np.ndarray:
    """Dense GCN-normalized adjacency for the temporal band graph."""
    A = np.zeros((num_nodes, num_nodes), dtype=np.float32)
    for i in range(num_nodes):
        left = max(0, i - k)
        right = min(num_nodes - 1, i + k)
        for j in list(range(left, i)) + list(range(i + 1, right + 1)):
            A[i, j] = 1.0  # symmetric band graph
    A = A + np.eye(num_nodes, dtype=np.float32)          # add self loops
    deg = A.sum(axis=1)
    d_inv_sqrt = 1.0 / np.sqrt(deg)
    A_hat = (d_inv_sqrt[:, None] * A) * d_inv_sqrt[None, :]
    return A_hat.astype(np.float32)


# ----------------------------------------------------------------------------
# Pallas kernel: fused two-layer GCN, whole batch lane-packed, one invocation.
#   xrep_ref : (N, B*H)  xrep[:, b*H + h] = x[b, :, 0]   (batch packed on lanes)
#   a_ref    : (N, N)    A_hat
#   w1t_ref  : (1, B*H)  W1 tiled B times along lanes
#   w2bd_ref : (B*H, B)  block-diagonal W2 (block b = w2)
#   bias_ref : (N, 1)    folded bias column  A_hat@1 * (b1@W2) + b2
#   o_ref    : (N, B)    output slab (one store); wrapper transposes to (B, N, 1)
# ----------------------------------------------------------------------------
def gcn2_kernel(xrep_ref, a_ref, w1t_ref, w2bd_ref, bias_ref, o_ref):
    a = a_ref[...]                                                # (N, N)
    # layer 1: X@W1 (contraction dim 1) as a VPU broadcast multiply on the slab
    xw1 = xrep_ref[...] * w1t_ref[...]                            # (N, B*H)  VPU
    h1 = jnp.dot(a, xw1, preferred_element_type=jnp.float32)      # (N, B*H)  MXU
    # layer 2 (reassociated): (A_hat @ H1) @ blockdiag(W2) + bias
    ah1 = jnp.dot(a, h1, preferred_element_type=jnp.float32)      # (N, B*H)  MXU
    out = jnp.dot(ah1, w2bd_ref[...],
                  preferred_element_type=jnp.float32) + bias_ref[...]   # (N, B)
    o_ref[...] = out.astype(o_ref.dtype)                          # single slab store


def gnn_forward(x, a_hat, w1, b1, w2, b2):
    """x: (B, N, 1) -> (B, N, 1).  Fused two-layer GCN forward."""
    B, N, C_in = x.shape
    H = w1.shape[1]
    C_out = w2.shape[1]
    assert C_in == 1 and C_out == 1 and w2.shape[0] == H

    f32 = jnp.float32

    # ---- wrapper-side layout plumbing & tiny parameter folds (all O(KiB)) ----
    xT = jnp.transpose(x[:, :, 0])                     # (N, B)
    x_rep = jnp.repeat(xT, H, axis=1)                  # (N, B*H)  lane-packed batch
    w1_tiled = jnp.tile(w1, (1, B))                    # (1, B*H)
    w2_bd = jnp.kron(jnp.eye(B, dtype=f32), w2)        # (B*H, B)  block-diag W2
    # Bias fold (exact up to fp reassociation; valid since there is no
    # nonlinearity between the two GCNConv layers):
    #   A_hat @ (1 b1) @ W2 + b2 = rowsum(A_hat)[:, None] * (b1 @ W2) + b2
    bias_col = jnp.sum(a_hat, axis=1, keepdims=True) * (b1 @ w2) + b2   # (N, 1)

    flops = 2 * 2 * N * N * (B * H) + 2 * N * (B * H) * B + 2 * N * B * H
    bytes_accessed = 4 * (x_rep.size + a_hat.size + w1_tiled.size
                          + w2_bd.size + bias_col.size + N * B)

    vspec = pl.BlockSpec(memory_space=_VMEM)           # full-array VMEM blocks
    out_nb = pl.pallas_call(
        gcn2_kernel,
        out_shape=jax.ShapeDtypeStruct((N, B), f32),
        in_specs=[vspec] * 5,
        out_specs=vspec,
        cost_estimate=pl.CostEstimate(flops=flops, transcendentals=0,
                                      bytes_accessed=bytes_accessed),
    )(x_rep, a_hat, w1_tiled, w2_bd, bias_col)

    # (N, B) -> (B, N, 1) to match the module's output layout.
    return jnp.transpose(out_nb)[..., None]


# ----------------------------------------------------------------------------
# Pure-JAX reference (exact original semantics: A @ (X @ W) + b, twice).
# ----------------------------------------------------------------------------
def gnn_forward_ref(x, a_hat, w1, b1, w2, b2):
    h1 = jnp.einsum("nm,bmf->bnf", a_hat, x @ w1) + b1
    h2 = jnp.einsum("nm,bmf->bnf", a_hat, h1 @ w2) + b2
    return h2


if __name__ == "__main__":
    # Small, deterministic problem setup.
    B = 2            # batch size
    N = 16           # num_nodes (sequence nodes of the 'ts_un' graph)
    K = 2            # temporal neighborhood radius
    C_IN, HIDDEN, C_OUT = 1, 16, 1

    key = jax.random.PRNGKey(0)
    k_x, k_w1, k_w2 = jax.random.split(key, 3)

    # Input: (B, N, 1) node features.
    x = jax.random.normal(k_x, (B, N, C_IN), dtype=jnp.float32)

    # Deterministic parameter init (Glorot-like weights, zero bias),
    # matching GCNConv(1, 16) and GCNConv(16, 1) shapes.
    def glorot(k, shape):
        fan_in, fan_out = shape
        limit = np.sqrt(6.0 / (fan_in + fan_out))
        return jax.random.uniform(k, shape, jnp.float32, -limit, limit)

    w1 = glorot(k_w1, (C_IN, HIDDEN))
    b1 = jnp.zeros((1, HIDDEN), dtype=jnp.float32)
    w2 = glorot(k_w2, (HIDDEN, C_OUT))
    b2 = jnp.zeros((1, C_OUT), dtype=jnp.float32)

    a_hat = jnp.asarray(build_normalized_adjacency(N, K))

    out = gnn_forward(x, a_hat, w1, b1, w2, b2)
    out = jax.block_until_ready(out)

    ref = gnn_forward_ref(x, a_hat, w1, b1, w2, b2)
    np.testing.assert_allclose(np.asarray(out), np.asarray(ref),
                               rtol=1e-4, atol=1e-5)

    assert out.shape == (B, N, C_OUT)
    print("KERNEL_OK")
</pallas_src>

<mosaic_0001>
module attributes {stable_mosaic.version = 11 : i64} {
  func.func @gcn2_kernel(%arg0: memref<16x32xf32, #tpu.memory_space<vmem>>, %arg1: memref<16x16xf32, #tpu.memory_space<vmem>>, %arg2: memref<1x32xf32, #tpu.memory_space<vmem>>, %arg3: memref<32x2xf32, #tpu.memory_space<vmem>>, %arg4: memref<16x1xf32, #tpu.memory_space<vmem>>, %arg5: memref<16x2xf32, #tpu.memory_space<vmem>>) attributes {dimension_semantics = [], scalar_prefetch = 0 : i64, scratch_operands = 0 : i64, tpu.core_type = #tpu.core_type<tc>} {
    %c0 = arith.constant 0 : index
    %c0_0 = arith.constant 0 : index
    %0 = vector.load %arg1[%c0, %c0_0] : memref<16x16xf32, #tpu.memory_space<vmem>>, vector<16x16xf32>
    %c0_1 = arith.constant 0 : index
    %c0_2 = arith.constant 0 : index
    %1 = vector.load %arg0[%c0_1, %c0_2] : memref<16x32xf32, #tpu.memory_space<vmem>>, vector<16x32xf32>
    %c0_3 = arith.constant 0 : index
    %c0_4 = arith.constant 0 : index
    %2 = vector.load %arg2[%c0_3, %c0_4] : memref<1x32xf32, #tpu.memory_space<vmem>>, vector<1x32xf32>
    %3 = vector.broadcast %2 : vector<1x32xf32> to vector<16x32xf32>
    %4 = arith.mulf %1, %3 : vector<16x32xf32>
    %cst = arith.constant dense<0.000000e+00> : vector<16x32xf32>
    %5 = tpu.matmul %0, %4, %cst {dimension_numbers = #tpu.dot_dimension_numbers<[1], [0], [0], [1], [0, 0, 1, 1], [], []>} : vector<16x16xf32>, vector<16x32xf32>, vector<16x32xf32> -> vector<16x32xf32>
    %cst_5 = arith.constant dense<0.000000e+00> : vector<16x32xf32>
    %6 = tpu.matmul %0, %5, %cst_5 {dimension_numbers = #tpu.dot_dimension_numbers<[1], [0], [0], [1], [0, 0, 1, 1], [], []>} : vector<16x16xf32>, vector<16x32xf32>, vector<16x32xf32> -> vector<16x32xf32>
    %c0_6 = arith.constant 0 : index
    %c0_7 = arith.constant 0 : index
    %7 = vector.load %arg3[%c0_6, %c0_7] : memref<32x2xf32, #tpu.memory_space<vmem>>, vector<32x2xf32>
    %cst_8 = arith.constant dense<0.000000e+00> : vector<16x2xf32>
    %8 = tpu.matmul %6, %7, %cst_8 {dimension_numbers = #tpu.dot_dimension_numbers<[1], [0], [0], [1], [0, 0, 1, 1], [], []>} : vector<16x32xf32>, vector<32x2xf32>, vector<16x2xf32> -> vector<16x2xf32>
    %c0_9 = arith.constant 0 : index
    %c0_10 = arith.constant 0 : index
    %9 = vector.load %arg4[%c0_9, %c0_10] : memref<16x1xf32, #tpu.memory_space<vmem>>, vector<16x1xf32>
    %10 = vector.broadcast %9 : vector<16x1xf32> to vector<16x2xf32>
    %11 = arith.addf %8, %10 : vector<16x2xf32>
    %c0_11 = arith.constant 0 : index
    %c0_12 = arith.constant 0 : index
    %12 = vector.load %arg5[%c0_11, %c0_12] : memref<16x2xf32, #tpu.memory_space<vmem>>, vector<16x2xf32>
    tpu.vector_store %arg5[%c0_11, %c0_12], %11 {strides = array<i32>} : memref<16x2xf32, #tpu.memory_space<vmem>>, vector<16x2xf32>,
    return
  }
}

</mosaic_0001>

<bundles_post_ra>
// kernel: tpu_custom_call.1
= control target key start
LH: loop header
LB: loop body
LE: loop exit
PB: predicated region body
PF: predicated region fallthrough
CT: control target
= control target key end

     0   :  { %vm33_vm0 = vcmask 130048   ;;  %v343_v13 = vmov 0   ;;  %vm206_vm1 = vcmask 261120   ;;  %vm288_vm2 = vcmask 15360   ;;  %s417_s0 = inlined_call_operand.vmem [shape: f32[16,32], index: 0, kind: input, shape index: {}]   ;;  %s418_s2 = inlined_call_operand.vmem [shape: f32[1,32], index: 2, kind: input, shape index: {}]   ;;  %s419_s1 = inlined_call_operand.vmem [shape: f32[16,16], index: 1, kind: input, shape index: {}]   ;;  %s420_s3 = inlined_call_operand.vmem [shape: f32[32,2], index: 3, kind: input, shape index: {}]   ;;  %s421_s4 = inlined_call_operand.vmem [shape: f32[16,1], index: 4, kind: input, shape index: {}]   ;;  %s422_s5 = inlined_call_operand.vmem [shape: f32[16,2], index: 5, kind: output, shape index: {}]  }
   0x1   :  { %v22_v0 = vld [vmem:[%s417_s0] sm:$0xff]  ;;  %v23_v1 = vld [vmem:[%s417_s0 + $0x8] sm:$0xff]  ;;  %v193_v7 = vld [vmem:[%s420_s3 + $0x18] sm:$0xff]  ;;  %342 = vset.pattern.permute.xlu0 %v343_v13 }
   0x2   :  { %v295_v2 = vld [vmem:[%s418_s2] ss:$0 sm:$0xff]  ;;  %v21_v6 = vld [vmem:[%s419_s1 + $0x8] sm:$0xff]  ;;  %v192_v8 = vld [vmem:[%s420_s3 + $0x10] sm:$0xff]  ;;  %330 = vmatprep.subr.mxu0 %v193_v7 }
   0x3   :  { %v31_v3 = vmul.f32 %v295_v2, %v22_v0  ;;  %v32_v4 = vmul.f32 %v295_v2, %v23_v1  ;;  %v20_v5 = vld [vmem:[%s419_s1] sm:$0xff]  ;;  %331 = vmatpush3.msra.mxu0 %v193_v7  ;;  %v191_v11 = vld [vmem:[%s420_s3 + $0x8] sm:$0xff] }
   0x4   :  { %320 = vmatprep.mubr.msk.f32.mxu1 %vm33_vm0, %v20_v5  ;;  %332 = vmatprep.subr.mxu0 %v192_v8  ;;  %v190_v12 = vld [vmem:[%s420_s3] sm:$0xff]  ;;  %v195_v15 = vld [vmem:[%s421_s4 + $0x8] sm:$0xff] }
   0x5   :  { %316 = vmatprep.subr.mxu1 %v32_v4  ;;  %333 = vmatpush3.msra.mxu0 %v192_v8  ;;  %v194_v14 = vld [vmem:[%s421_s4] sm:$0xff] }
   0x6   :  { %317 = vmatpush3.msra.mxu1 %v32_v4  ;;  %334 = vmatprep.subr.mxu0 %v191_v11 }
   0x7   :  { %318 = vmatprep.subr.mxu1 %v31_v3  ;;  %335 = vmatpush3.msra.mxu0 %v191_v11 }
   0x8   :  { %319 = vmatpush3.msra.mxu1 %v31_v3  ;;  %336 = vmatprep.subr.mxu0 %v190_v12 }
   0x9   :  { %321 = vmatmul.mubr.msk.f32.vlgmr.msra.gmra.mxu1 %vm33_vm0, %v21_v6  ;;  %337 = vmatpush3.msra.mxu0 %v190_v12 }
   0xa   :  { %327 = vmatprep.mubr.msk.f32.mxu1 %vm33_vm0, %v20_v5  ;;  %198 = vperm.xlu0 %342, %v194_v14  }
   0xe   :  { %203 = vperm.xlu0 %342, %v195_v15  }
  0x85   :  { %v199_v18 = vpop.permute.xlu0 %198 }
  0x89   :  { %v204_v19 = vpop.permute.xlu0 %203 }
  0xc9   :  { %v322_v9 = vpop.f32.mrf.mxu1 }
  0xca   :  { %323 = vmatprep.subr.mxu1 %v322_v9 }
  0xcb   :  { %v106_v10 = vpop.f32.mrf.mxu1  ;;  %324 = vmatpush3.msra.mxu1 %v322_v9 }
  0xcc   :  { %325 = vmatprep.subr.mxu1 %v106_v10 }
  0xcd   :  { %326 = vmatpush3.msra.mxu1 %v106_v10 }
  0xce   :  { %328 = vmatmul.mubr.msk.f32.vlgmr.msra.gmra.mxu1 %vm33_vm0, %v21_v6 }
 0x18e   :  { %v329_v16 = vpop.f32.mrf.mxu1 }
 0x190   :  { %v181_v17 = vpop.f32.mrf.mxu1 }
 0x191   :  { %338 = vmatprep.mubr.msk.f32.mxu0 %vm206_vm1, %v181_v17 }
 0x192   :  { %339 = vmatmul.mubr.msk.f32.vlgmr.msra.gmra.mxu0 %vm206_vm1, %v329_v16 }
 0x252   :  { %v340_v20 = vpop.f32.mrf.mxu0 }
 0x253   :  { %v285_v21 = vadd.f32 %v340_v20, %v204_v19 }
 0x254   :  { %v279_v22 = vpop.f32.mrf.mxu0 }
 0x255   :  { %290 = vst.msk [vmem:[%s422_s5 + $0x8] sm:$0xff] %vm288_vm2, %v285_v21  ;;  %v280_v23 = vadd.f32 %v279_v22, %v199_v18 }
 0x257   :  { %289 = vst.msk [vmem:[%s422_s5] sm:$0xff] %vm288_vm2, %v280_v23 }

</bundles_post_ra>
